<compile_context>
chip_gen: v5e
topology: v5e:2x2
jax: 0.10.0
libtpu: 0.0.40
codegen_flags: <defaults>
</compile_context>

<pallas_src>
import functools

import jax
import jax.numpy as jnp
from jax.experimental import pallas as pl
from jax.experimental.pallas import tpu as pltpu

LANE = 128        # TPU lane width: pad every feature / hidden / class dim to this
ROW_TILE = 128    # A_hat row tile (parallel grid axis)
K_TILE_MAX = 512  # max contraction tile over A columns / XW rows


def _round_up(v, m):
    return (v + m - 1) // m * m


def _pad2d(x, rows, cols):
    r, c = x.shape
    return jnp.pad(x, ((0, rows - r), (0, cols - c)))


def _pick_k_tile(n_pad):
    # largest "nice" multiple of 128 that divides n_pad (n_pad is a multiple of 128)
    for cand in (K_TILE_MAX, 384, 256, 128):
        if n_pad % cand == 0:
            return cand
    return 128


# ----------------------------------------------------------------------------
# Pallas kernels
# ----------------------------------------------------------------------------
def _xw_kernel(x_ref, w1_ref, xw_ref):
    # XW = X @ W1, hoisted so every A-row tile reuses it instead of re-streaming X.
    xw = jnp.dot(x_ref[...], w1_ref[...], preferred_element_type=jnp.float32)
    xw_ref[...] = xw.astype(xw_ref.dtype)  # bf16 for the next MXU stage


def _fused_forward_kernel(a_ref, xw_ref, w2_ref, b_ref,
                          logits_ref, logp_ref, acc_ref, *, n_classes):
    k = pl.program_id(1)

    @pl.when(k == 0)
    def _():
        acc_ref[...] = jnp.zeros_like(acc_ref)

    # self_supervised GCN layer contraction: acc += A_tile @ XW_tile (f32 accumulation)
    acc_ref[...] += jnp.dot(a_ref[...], xw_ref[...],
                            preferred_element_type=jnp.float32)

    @pl.when(k == pl.num_programs(1) - 1)
    def _():
        # latent = relu(A @ XW)   (elementwise kept in f32 for v5e)
        latent = jnp.maximum(acc_ref[...], 0.0)

        # supervised linear head: logits = latent @ W2 + b (only MXU operand goes bf16)
        logits = jnp.dot(latent.astype(w2_ref.dtype), w2_ref[...],
                         preferred_element_type=jnp.float32) + b_ref[...]
        logits_ref[...] = logits

        # fused, numerically stable log_softmax over the REAL class lanes only
        lane = jax.lax.broadcasted_iota(jnp.int32, logits.shape, 1)
        valid = lane < n_classes
        z = jnp.where(valid, logits, jnp.float32(-1e30))
        m = jnp.max(z, axis=1, keepdims=True)
        s = z - m
        e = jnp.where(valid, jnp.exp(s), 0.0)
        lse = jnp.log(jnp.sum(e, axis=1, keepdims=True))
        logp_ref[...] = s - lse


# ----------------------------------------------------------------------------
# Fused runner (single jit; forward / test_step / predict all reuse it)
# ----------------------------------------------------------------------------
@jax.jit
def _fused_run(a_hat, x, w1, w2, b):
    n, f = x.shape
    h = w1.shape[1]
    c = w2.shape[1]
    n_pad = _round_up(n, ROW_TILE)
    f_pad = _round_up(f, LANE)
    h_pad = _round_up(h, LANE)
    c_pad = _round_up(c, LANE)
    k_tile = _pick_k_tile(n_pad)

    # lane/row-pad; MXU operands to bf16, bias stays f32
    a_p = _pad2d(a_hat, n_pad, n_pad).astype(jnp.bfloat16)
    x_p = _pad2d(x, n_pad, f_pad).astype(jnp.bfloat16)
    w1_p = _pad2d(w1, f_pad, h_pad).astype(jnp.bfloat16)
    w2_p = _pad2d(w2, h_pad, c_pad).astype(jnp.bfloat16)
    b_p = _pad2d(b, 1, c_pad).astype(jnp.float32)

    n_row_tiles = n_pad // ROW_TILE
    n_k_tiles = n_pad // k_tile

    # --- call 1 (tiny): XW = X @ W1, computed once ---------------------------
    xw = pl.pallas_call(
        _xw_kernel,
        out_shape=jax.ShapeDtypeStruct((n_pad, h_pad), jnp.bfloat16),
        grid=(n_row_tiles,),
        in_specs=[pl.BlockSpec((ROW_TILE, f_pad), lambda i: (i, 0)),
                  pl.BlockSpec((f_pad, h_pad), lambda i: (0, 0))],
        out_specs=pl.BlockSpec((ROW_TILE, h_pad), lambda i: (i, 0)),
        compiler_params=pltpu.CompilerParams(
            dimension_semantics=("parallel",)),
        cost_estimate=pl.CostEstimate(
            flops=2 * n_pad * f_pad * h_pad,
            transcendentals=0,
            bytes_accessed=2 * (n_pad * f_pad + f_pad * h_pad + n_pad * h_pad)),
    )(x_p, w1_p)

    # --- call 2 (fused): A-matmul (K-tiled) + relu + head + log_softmax ------
    kernel = functools.partial(_fused_forward_kernel, n_classes=c)
    logits_p, logp_p = pl.pallas_call(
        kernel,
        out_shape=(jax.ShapeDtypeStruct((n_pad, c_pad), jnp.float32),
                   jax.ShapeDtypeStruct((n_pad, c_pad), jnp.float32)),
        grid=(n_row_tiles, n_k_tiles),
        in_specs=[pl.BlockSpec((ROW_TILE, k_tile), lambda i, k: (i, k)),  # A tile
                  pl.BlockSpec((k_tile, h_pad), lambda i, k: (k, 0)),     # XW tile
                  pl.BlockSpec((h_pad, c_pad), lambda i, k: (0, 0)),      # W2 (resident)
                  pl.BlockSpec((1, c_pad), lambda i, k: (0, 0))],         # bias
        out_specs=(pl.BlockSpec((ROW_TILE, c_pad), lambda i, k: (i, 0)),
                   pl.BlockSpec((ROW_TILE, c_pad), lambda i, k: (i, 0))),
        scratch_shapes=[pltpu.VMEM((ROW_TILE, h_pad), jnp.float32)],
        compiler_params=pltpu.CompilerParams(
            dimension_semantics=("parallel", "arbitrary"),
            vmem_limit_bytes=32 * 1024 * 1024),
        cost_estimate=pl.CostEstimate(
            flops=2 * n_pad * n_pad * h_pad + 2 * n_pad * h_pad * c_pad,
            transcendentals=n_pad * c_pad,
            bytes_accessed=(2 * n_pad * n_pad + 2 * n_pad * h_pad
                            + 2 * h_pad * c_pad + 4 * c_pad
                            + 2 * 4 * n_pad * c_pad)),
    )(a_p, xw, w2_p, b_p)

    return logits_p[:n, :c], logp_p[:n, :c]


# ----------------------------------------------------------------------------
# Public wrappers matching the PyTorch module surface
# ----------------------------------------------------------------------------
def semi_supervised_forward(a_hat, x, w1, w2, b):
    logits, _ = _fused_run(a_hat, x, w1, w2, b)
    return logits


def semi_supervised_test_step(a_hat, x, w1, w2, b):
    _, log_probs = _fused_run(a_hat, x, w1, w2, b)
    return log_probs


def semi_supervised_predict(a_hat, x, w1, w2, b):
    # argmax(log_softmax(z)) == argmax(z): skip the softmax work for predict.
    logits, _ = _fused_run(a_hat, x, w1, w2, b)
    return jnp.argmax(logits, axis=1)


# ----------------------------------------------------------------------------
# Glue: dense normalized adjacency from edge_index (plain JAX, not hot path)
# ----------------------------------------------------------------------------
def normalized_adjacency(edge_index, num_nodes):
    src, dst = edge_index[0], edge_index[1]
    a = jnp.zeros((num_nodes, num_nodes), jnp.float32)
    a = a.at[src, dst].set(1.0)
    a = a.at[dst, src].set(1.0)  # symmetrize
    eye = jnp.eye(num_nodes, dtype=bool)
    a = jnp.where(eye, 1.0, a)   # A + I, diagonal clamped to exactly 1
    deg = jnp.sum(a, axis=1)
    d_inv_sqrt = 1.0 / jnp.sqrt(jnp.maximum(deg, 1.0))
    return a * d_inv_sqrt[:, None] * d_inv_sqrt[None, :]


# TODO(synk): for very large / sparse graphs, replace the dense A_hat matmul with a
# scalar-prefetch neighbor-gather kernel (PrefetchScalarGridSpec) to escape the O(N^2)
# HBM roofline.

# TODO(synk): train_step (nll_loss + optimizer update) is training glue, not part of
# the forward hot path; omitted.

# ----------------------------------------------------------------------------
# Main
# ----------------------------------------------------------------------------
if __name__ == "__main__":
    key = jax.random.PRNGKey(0)
    k_x, k_w1, k_w2, k_b = jax.random.split(key, 4)

    N_NODES = 8   # number of graph nodes
    N_FEAT = 32   # input node-feature dim
    N_HID = 16    # latent dim produced by self_supervised_model
    N_CLS = 4     # classes produced by supervised_model

    x = jax.random.normal(k_x, (N_NODES, N_FEAT), jnp.float32)
    w1 = jax.random.normal(k_w1, (N_FEAT, N_HID), jnp.float32) * 0.1
    w2 = jax.random.normal(k_w2, (N_HID, N_CLS), jnp.float32) * 0.1
    b = jax.random.normal(k_b, (1, N_CLS), jnp.float32) * 0.1

    # simple ring graph edge_index [2, E]
    src = jnp.arange(N_NODES, dtype=jnp.int32)
    dst = (src + 1) % N_NODES
    edge_index = jnp.stack([src, dst], axis=0)

    a_hat = normalized_adjacency(edge_index, N_NODES)

    logits = jax.block_until_ready(semi_supervised_forward(a_hat, x, w1, w2, b))
    log_probs = jax.block_until_ready(semi_supervised_test_step(a_hat, x, w1, w2, b))
    preds = jax.block_until_ready(semi_supervised_predict(a_hat, x, w1, w2, b))

    # sanity checks against plain-JAX f32 reference (bf16 MXU inputs -> looser tol)
    latent_ref = jnp.maximum(a_hat @ x @ w1, 0.0)
    logits_ref = latent_ref @ w2 + b
    log_probs_ref = jax.nn.log_softmax(logits_ref, axis=1)
    assert logits.shape == (N_NODES, N_CLS)
    assert log_probs.shape == (N_NODES, N_CLS)
    assert jnp.allclose(logits, logits_ref, atol=5e-2, rtol=5e-2)
    assert jnp.allclose(log_probs, log_probs_ref, atol=5e-2, rtol=5e-2)
    # predict identity: argmax over logits equals argmax over fused log-probs
    assert jnp.all(preds == jnp.argmax(log_probs, axis=1))

    print("KERNEL_OK")
</pallas_src>

<mosaic_0001>
module attributes {stable_mosaic.version = 11 : i64} {
  func.func @_xw_kernel(%arg0: i32, %arg1: memref<128x128xbf16, #tpu.memory_space<vmem>>, %arg2: memref<128x128xbf16, #tpu.memory_space<vmem>>, %arg3: memref<128x128xbf16, #tpu.memory_space<vmem>>) attributes {dimension_semantics = [#tpu.dimension_semantics<parallel>], iteration_bounds = array<i64: 1>, scalar_prefetch = 0 : i64, scratch_operands = 0 : i64, tpu.core_type = #tpu.core_type<tc>, window_params = [{transform_indices = @transform_0, window_bounds = array<i64: 128, 128>}, {pipeline_mode = #tpu.pipeline_mode<synchronous>, transform_indices = @transform_1, window_bounds = array<i64: 128, 128>}, {transform_indices = @transform_2, window_bounds = array<i64: 128, 128>}]} {
    %c0 = arith.constant 0 : index
    %c0_0 = arith.constant 0 : index
    %0 = vector.load %arg1[%c0, %c0_0] : memref<128x128xbf16, #tpu.memory_space<vmem>>, vector<128x128xbf16>
    %c0_1 = arith.constant 0 : index
    %c0_2 = arith.constant 0 : index
    %1 = vector.load %arg2[%c0_1, %c0_2] : memref<128x128xbf16, #tpu.memory_space<vmem>>, vector<128x128xbf16>
    %cst = arith.constant dense<0.000000e+00> : vector<128x128xf32>
    %2 = tpu.matmul %0, %1, %cst {dimension_numbers = #tpu.dot_dimension_numbers<[1], [0], [0], [1], [0, 0, 1, 1], [], []>} : vector<128x128xbf16>, vector<128x128xbf16>, vector<128x128xf32> -> vector<128x128xf32>
    %3 = arith.truncf %2 : vector<128x128xf32> to vector<128x128xbf16>
    %c0_3 = arith.constant 0 : index
    %c0_4 = arith.constant 0 : index
    %4 = vector.load %arg3[%c0_3, %c0_4] : memref<128x128xbf16, #tpu.memory_space<vmem>>, vector<128x128xbf16>
    tpu.vector_store %arg3[%c0_3, %c0_4], %3 {strides = array<i32>} : memref<128x128xbf16, #tpu.memory_space<vmem>>, vector<128x128xbf16>,
    return
  }
  func.func @transform_0(%arg0: i32) -> (i32, i32) {
    %c0_i32 = arith.constant 0 : i32
    %c0_i32_0 = arith.constant 0 : i32
    return %arg0, %c0_i32 : i32, i32
  }
  func.func @transform_1(%arg0: i32) -> (i32, i32) {
    %c0_i32 = arith.constant 0 : i32
    %c0_i32_0 = arith.constant 0 : i32
    %c0_i32_1 = arith.constant 0 : i32
    return %c0_i32, %c0_i32_0 : i32, i32
  }
  func.func @transform_2(%arg0: i32) -> (i32, i32) {
    %c0_i32 = arith.constant 0 : i32
    %c0_i32_0 = arith.constant 0 : i32
    return %arg0, %c0_i32 : i32, i32
  }
}

module attributes {stable_mosaic.version = 11 : i64} {
  func.func @_fused_forward_kernel(%arg0: i32, %arg1: i32, %arg2: memref<128x128xbf16, #tpu.memory_space<vmem>>, %arg3: memref<128x128xbf16, #tpu.memory_space<vmem>>, %arg4: memref<128x128xbf16, #tpu.memory_space<vmem>>, %arg5: memref<1x128xf32, #tpu.memory_space<vmem>>, %arg6: memref<128x128xf32, #tpu.memory_space<vmem>>, %arg7: memref<128x128xf32, #tpu.memory_space<vmem>>, %arg8: memref<128x128xf32, #tpu.memory_space<vmem>>) attributes {dimension_semantics = [#tpu.dimension_semantics<parallel>, #tpu.dimension_semantics<arbitrary>], iteration_bounds = array<i64: 1, 1>, scalar_prefetch = 0 : i64, scratch_operands = 1 : i64, tpu.core_type = #tpu.core_type<tc>, window_params = [{transform_indices = @transform_0, window_bounds = array<i64: 128, 128>}, {transform_indices = @transform_1, window_bounds = array<i64: 128, 128>}, {pipeline_mode = #tpu.pipeline_mode<synchronous>, transform_indices = @transform_2, window_bounds = array<i64: 128, 128>}, {pipeline_mode = #tpu.pipeline_mode<synchronous>, transform_indices = @transform_3, window_bounds = array<i64: 1, 128>}, {transform_indices = @transform_4, window_bounds = array<i64: 128, 128>}, {transform_indices = @transform_5, window_bounds = array<i64: 128, 128>}]} {
    %c0_i32 = arith.constant 0 : i32
    %0 = arith.cmpi eq, %arg1, %c0_i32 : i32
    %1 = arith.extui %0 : i1 to i32
    %c0_i32_0 = arith.constant 0 : i32
    %2 = arith.cmpi ne, %1, %c0_i32_0 : i32
    scf.if %2 {
      %cst_10 = arith.constant 0.000000e+00 : f32
      %12 = vector.broadcast %cst_10 : f32 to vector<128x128xf32>
      %c0_11 = arith.constant 0 : index
      %c0_12 = arith.constant 0 : index
      %13 = vector.load %arg8[%c0_11, %c0_12] : memref<128x128xf32, #tpu.memory_space<vmem>>, vector<128x128xf32>
      tpu.vector_store %arg8[%c0_11, %c0_12], %12 {strides = array<i32>} : memref<128x128xf32, #tpu.memory_space<vmem>>, vector<128x128xf32>,
    } else {
    }
    %c0 = arith.constant 0 : index
    %c0_1 = arith.constant 0 : index
    %3 = vector.load %arg8[%c0, %c0_1] : memref<128x128xf32, #tpu.memory_space<vmem>>, vector<128x128xf32>
    %c0_2 = arith.constant 0 : index
    %c0_3 = arith.constant 0 : index
    %4 = vector.load %arg2[%c0_2, %c0_3] : memref<128x128xbf16, #tpu.memory_space<vmem>>, vector<128x128xbf16>
    %c0_4 = arith.constant 0 : index
    %c0_5 = arith.constant 0 : index
    %5 = vector.load %arg3[%c0_4, %c0_5] : memref<128x128xbf16, #tpu.memory_space<vmem>>, vector<128x128xbf16>
    %cst = arith.constant dense<0.000000e+00> : vector<128x128xf32>
    %6 = tpu.matmul %4, %5, %cst {dimension_numbers = #tpu.dot_dimension_numbers<[1], [0], [0], [1], [0, 0, 1, 1], [], []>} : vector<128x128xbf16>, vector<128x128xbf16>, vector<128x128xf32> -> vector<128x128xf32>
    %7 = arith.addf %3, %6 : vector<128x128xf32>
    %c0_6 = arith.constant 0 : index
    %c0_7 = arith.constant 0 : index
    %8 = vector.load %arg8[%c0_6, %c0_7] : memref<128x128xf32, #tpu.memory_space<vmem>>, vector<128x128xf32>
    tpu.vector_store %arg8[%c0_6, %c0_7], %7 {strides = array<i32>} : memref<128x128xf32, #tpu.memory_space<vmem>>, vector<128x128xf32>,
    %c0_i32_8 = arith.constant 0 : i32
    %9 = arith.cmpi eq, %arg1, %c0_i32_8 : i32
    %10 = arith.extui %9 : i1 to i32
    %c0_i32_9 = arith.constant 0 : i32
    %11 = arith.cmpi ne, %10, %c0_i32_9 : i32
    scf.if %11 {
      %c0_10 = arith.constant 0 : index
      %c0_11 = arith.constant 0 : index
      %12 = vector.load %arg8[%c0_10, %c0_11] : memref<128x128xf32, #tpu.memory_space<vmem>>, vector<128x128xf32>
      %cst_12 = arith.constant 0.000000e+00 : f32
      %13 = vector.broadcast %cst_12 : f32 to vector<128x128xf32>
      %14 = arith.maximumf %12, %13 : vector<128x128xf32>
      %15 = arith.truncf %14 : vector<128x128xf32> to vector<128x128xbf16>
      %c0_13 = arith.constant 0 : index
      %c0_14 = arith.constant 0 : index
      %16 = vector.load %arg4[%c0_13, %c0_14] : memref<128x128xbf16, #tpu.memory_space<vmem>>, vector<128x128xbf16>
      %cst_15 = arith.constant dense<0.000000e+00> : vector<128x128xf32>
      %17 = tpu.matmul %15, %16, %cst_15 {dimension_numbers = #tpu.dot_dimension_numbers<[1], [0], [0], [1], [0, 0, 1, 1], [], []>} : vector<128x128xbf16>, vector<128x128xbf16>, vector<128x128xf32> -> vector<128x128xf32>
      %c0_16 = arith.constant 0 : index
      %c0_17 = arith.constant 0 : index
      %18 = vector.load %arg5[%c0_16, %c0_17] : memref<1x128xf32, #tpu.memory_space<vmem>>, vector<1x128xf32>
      %19 = vector.broadcast %18 : vector<1x128xf32> to vector<128x128xf32>
      %20 = arith.addf %17, %19 : vector<128x128xf32>
      %c0_18 = arith.constant 0 : index
      %c0_19 = arith.constant 0 : index
      %21 = vector.load %arg6[%c0_18, %c0_19] : memref<128x128xf32, #tpu.memory_space<vmem>>, vector<128x128xf32>
      tpu.vector_store %arg6[%c0_18, %c0_19], %20 {strides = array<i32>} : memref<128x128xf32, #tpu.memory_space<vmem>>, vector<128x128xf32>,
      %22 = tpu.iota {dimensions = array<i32: 1>} : vector<128x128xi32>
      %c4_i32 = arith.constant 4 : i32
      %23 = vector.broadcast %c4_i32 : i32 to vector<128x128xi32>
      %24 = arith.cmpi slt, %22, %23 : vector<128x128xi32>
      %cst_20 = arith.constant -1.000000e+30 : f32
      %25 = vector.broadcast %cst_20 : f32 to vector<128x128xf32>
      %26 = arith.select %24, %20, %25 : vector<128x128xi1>, vector<128x128xf32>
      %cst_21 = arith.constant dense<0xFF800000> : vector<128xf32>
      %27 = vector.multi_reduction <maximumf>, %26, %cst_21 [1] : vector<128x128xf32> to vector<128xf32>
      %28 = vector.shape_cast %27 : vector<128xf32> to vector<128x1xf32>
      %29 = vector.broadcast %28 : vector<128x1xf32> to vector<128x128xf32>
      %30 = arith.subf %26, %29 : vector<128x128xf32>
      %31 = math.exp %30 : vector<128x128xf32>
      %cst_22 = arith.constant 0.000000e+00 : f32
      %32 = vector.broadcast %cst_22 : f32 to vector<128x128xf32>
      %33 = arith.select %24, %31, %32 : vector<128x128xi1>, vector<128x128xf32>
      %cst_23 = arith.constant dense<0.000000e+00> : vector<128xf32>
      %34 = vector.multi_reduction <add>, %33, %cst_23 [1] : vector<128x128xf32> to vector<128xf32>
      %35 = vector.shape_cast %34 : vector<128xf32> to vector<128x1xf32>
      %36 = math.log %35 : vector<128x1xf32>
      %37 = vector.broadcast %36 : vector<128x1xf32> to vector<128x128xf32>
      %38 = arith.subf %30, %37 : vector<128x128xf32>
      %c0_24 = arith.constant 0 : index
      %c0_25 = arith.constant 0 : index
      %39 = vector.load %arg7[%c0_24, %c0_25] : memref<128x128xf32, #tpu.memory_space<vmem>>, vector<128x128xf32>
      tpu.vector_store %arg7[%c0_24, %c0_25], %38 {strides = array<i32>} : memref<128x128xf32, #tpu.memory_space<vmem>>, vector<128x128xf32>,
    } else {
    }
    return
  }
  func.func @transform_0(%arg0: i32, %arg1: i32) -> (i32, i32) {
    %c0_i32 = arith.constant 0 : i32
    return %arg0, %arg1 : i32, i32
  }
  func.func @transform_1(%arg0: i32, %arg1: i32) -> (i32, i32) {
    %c0_i32 = arith.constant 0 : i32
    %c0_i32_0 = arith.constant 0 : i32
    return %arg1, %c0_i32 : i32, i32
  }
  func.func @transform_2(%arg0: i32, %arg1: i32) -> (i32, i32) {
    %c0_i32 = arith.constant 0 : i32
    %c0_i32_0 = arith.constant 0 : i32
    %c0_i32_1 = arith.constant 0 : i32
    return %c0_i32, %c0_i32_0 : i32, i32
  }
  func.func @transform_3(%arg0: i32, %arg1: i32) -> (i32, i32) {
    %c0_i32 = arith.constant 0 : i32
    %c0_i32_0 = arith.constant 0 : i32
    %c0_i32_1 = arith.constant 0 : i32
    return %c0_i32, %c0_i32_0 : i32, i32
  }
  func.func @transform_4(%arg0: i32, %arg1: i32) -> (i32, i32) {
    %c0_i32 = arith.constant 0 : i32
    %c0_i32_0 = arith.constant 0 : i32
    return %arg0, %c0_i32 : i32, i32
  }
  func.func @transform_5(%arg0: i32, %arg1: i32) -> (i32, i32) {
    %c0_i32 = arith.constant 0 : i32
    %c0_i32_0 = arith.constant 0 : i32
    return %arg0, %c0_i32 : i32, i32
  }
}

</mosaic_0001>

<bundles_post_ra>
// kernel: _fused_run.2
= control target key start
LH: loop header
LB: loop body
LE: loop exit
PB: predicated region body
PF: predicated region fallthrough
CT: control target
= control target key end

     0   :  { %s462_s1 = inlined_call_operand.vmem [shape: bf16[128,128], index: 1, kind: input, shape index: {}]   ;;  %s463_s0 = inlined_call_operand.vmem [shape: bf16[128,128], index: 0, kind: input, shape index: {}]   ;;  %s464_s2 = inlined_call_operand.vmem [shape: bf16[128,128], index: 2, kind: output, shape index: {}]  }
   0x1   :  { %v303_v0 = vld [vmem:[%s462_s1 + $0x38] sm:$0xff]  ;;  %v302_v1 = vld [vmem:[%s462_s1 + $0x30] sm:$0xff]  ;;  %v301_v2 = vld [vmem:[%s462_s1 + $0x28] sm:$0xff] }
   0x2   :  { %139 = vmatpush.bf16.msra.mxu0 %v303_v0  ;;  %351 = vmatpush.bf16.msra.mxu1 %v303_v0  ;;  %v300_v3 = vld [vmem:[%s462_s1 + $0x20] sm:$0xff]  ;;  %v299_v4 = vld [vmem:[%s462_s1 + $0x18] sm:$0xff]  ;;  %v298_v5 = vld [vmem:[%s462_s1 + $0x10] sm:$0xff] }
   0x3   :  { %352 = vmatpush.bf16.msra.mxu2 %v303_v0  ;;  %353 = vmatpush.bf16.msra.mxu3 %v303_v0  ;;  %v297_v6 = vld [vmem:[%s462_s1 + $0x8] sm:$0xff]  ;;  %v296_v7 = vld [vmem:[%s462_s1] sm:$0xff]  ;;  %v290_v9 = vld [vmem:[%s463_s0 + $0x10] sm:$0xff] }
   0x4   :  { %v288_v8 = vld [vmem:[%s463_s0] sm:$0xff]  ;;  %v294_v11 = vld [vmem:[%s463_s0 + $0x30] sm:$0xff]  ;;  %v289_v12 = vld [vmem:[%s463_s0 + $0x8] sm:$0xff] }
   0x5   :  { %v292_v10 = vld [vmem:[%s463_s0 + $0x20] sm:$0xff]  ;;  %v291_v13 = vld [vmem:[%s463_s0 + $0x18] sm:$0xff]  ;;  %v293_v14 = vld [vmem:[%s463_s0 + $0x28] sm:$0xff] }
   0x6   :  { %140 = vmatpush.bf16.msra.mxu0 %v302_v1  ;;  %354 = vmatpush.bf16.msra.mxu1 %v302_v1  ;;  %v295_v15 = vld [vmem:[%s463_s0 + $0x38] sm:$0xff] }
   0x7   :  { %355 = vmatpush.bf16.msra.mxu2 %v302_v1  ;;  %356 = vmatpush.bf16.msra.mxu3 %v302_v1 }
   0xa   :  { %141 = vmatpush.bf16.msra.mxu0 %v301_v2  ;;  %357 = vmatpush.bf16.msra.mxu1 %v301_v2 }
   0xb   :  { %358 = vmatpush.bf16.msra.mxu2 %v301_v2  ;;  %359 = vmatpush.bf16.msra.mxu3 %v301_v2 }
   0xe   :  { %142 = vmatpush.bf16.msra.mxu0 %v300_v3  ;;  %360 = vmatpush.bf16.msra.mxu1 %v300_v3 }
   0xf   :  { %361 = vmatpush.bf16.msra.mxu2 %v300_v3  ;;  %362 = vmatpush.bf16.msra.mxu3 %v300_v3 }
  0x12   :  { %143 = vmatpush.bf16.msra.mxu0 %v299_v4  ;;  %363 = vmatpush.bf16.msra.mxu1 %v299_v4 }
  0x13   :  { %364 = vmatpush.bf16.msra.mxu2 %v299_v4  ;;  %365 = vmatpush.bf16.msra.mxu3 %v299_v4 }
  0x16   :  { %144 = vmatpush.bf16.msra.mxu0 %v298_v5  ;;  %366 = vmatpush.bf16.msra.mxu1 %v298_v5 }
  0x17   :  { %367 = vmatpush.bf16.msra.mxu2 %v298_v5  ;;  %368 = vmatpush.bf16.msra.mxu3 %v298_v5 }
  0x1a   :  { %145 = vmatpush.bf16.msra.mxu0 %v297_v6  ;;  %369 = vmatpush.bf16.msra.mxu1 %v297_v6 }
  0x1b   :  { %370 = vmatpush.bf16.msra.mxu2 %v297_v6  ;;  %371 = vmatpush.bf16.msra.mxu3 %v297_v6 }
  0x1e   :  { %146 = vmatpush.bf16.msra.mxu0 %v296_v7  ;;  %372 = vmatpush.bf16.msra.mxu1 %v296_v7 }
  0x1f   :  { %373 = vmatpush.bf16.msra.mxu2 %v296_v7  ;;  %374 = vmatpush.bf16.msra.mxu3 %v296_v7 }
  0x21   :  { %147 = vmatmul.bf16.vlgmr.msra.gmra.mxu0 %v288_v8  ;;  %157 = vmatmul.bf16.vlgmr.msra.gmra.mxu1 %v290_v9 }
  0x22   :  { %167 = vmatmul.bf16.vlgmr.msra.gmra.mxu2 %v292_v10  ;;  %177 = vmatmul.bf16.vlgmr.msra.gmra.mxu3 %v294_v11 }
  0x31   :  { %152 = vmatmul.bf16.gmra.mxu0 %v289_v12  ;;  %162 = vmatmul.bf16.gmra.mxu1 %v291_v13 }
  0x32   :  { %172 = vmatmul.bf16.gmra.mxu2 %v293_v14  ;;  %182 = vmatmul.bf16.gmra.mxu3 %v295_v15 }
  0x9e   :  { %v148_v16 = vpop.f32.mrf.mxu0  ;;  %v158_v17 = vpop.f32.mrf.mxu1 }
  0xa5   :  { %v168_v18 = vpop.f32.mrf.mxu2  ;;  %v178_v19 = vpop.f32.mrf.mxu3 }
  0xa6   :  { %v150_v20 = vpop.f32.mrf.mxu0  ;;  %v160_v21 = vpop.f32.mrf.mxu1 }
  0xa7   :  { %v307_v22 = vpack.c.bf16 %v150_v20, %v148_v16  ;;  %v317_v23 = vpack.c.bf16 %v160_v21, %v158_v17 }
  0xa9   :  { %308 = vst [vmem:[%s464_s2] sm:$0xff] %v307_v22  }
  0xaa   :  { %345 = vst [vmem:[%s464_s2 + $0x10] sm:$0xff] %v317_v23  }
  0xad   :  { %v170_v24 = vpop.f32.mrf.mxu2  ;;  %v180_v25 = vpop.f32.mrf.mxu3 }
  0xae   :  { %v327_v26 = vpack.c.bf16 %v170_v24, %v168_v18  ;;  %v337_v27 = vpack.c.bf16 %v180_v25, %v178_v19  ;;  %v153_v28 = vpop.f32.mrf.mxu0  ;;  %v163_v29 = vpop.f32.mrf.mxu1 }
  0xb0   :  { %347 = vst [vmem:[%s464_s2 + $0x20] sm:$0xff] %v327_v26  }
  0xb1   :  { %349 = vst [vmem:[%s464_s2 + $0x30] sm:$0xff] %v337_v27  }
  0xb5   :  { %v173_v30 = vpop.f32.mrf.mxu2  ;;  %v183_v31 = vpop.f32.mrf.mxu3 }
  0xb6   :  { %v155_v32 = vpop.f32.mrf.mxu0  ;;  %v165_v33 = vpop.f32.mrf.mxu1 }
  0xb7   :  { %v312_v34 = vpack.c.bf16 %v155_v32, %v153_v28  ;;  %v322_v35 = vpack.c.bf16 %v165_v33, %v163_v29 }
  0xb9   :  { %344 = vst [vmem:[%s464_s2 + $0x8] sm:$0xff] %v312_v34  }
  0xba   :  { %346 = vst [vmem:[%s464_s2 + $0x18] sm:$0xff] %v322_v35  }
  0xbd   :  { %v175_v36 = vpop.f32.mrf.mxu2  ;;  %v185_v37 = vpop.f32.mrf.mxu3 }
  0xbe   :  { %v332_v38 = vpack.c.bf16 %v175_v36, %v173_v30  ;;  %v342_v39 = vpack.c.bf16 %v185_v37, %v183_v31 }
  0xc0   :  { %348 = vst [vmem:[%s464_s2 + $0x28] sm:$0xff] %v332_v38  }
  0xc1   :  { %350 = vst [vmem:[%s464_s2 + $0x38] sm:$0xff] %v342_v39  }

// kernel: _fused_run.3
= control target key start
LH: loop header
LB: loop body
LE: loop exit
PB: predicated region body
PF: predicated region fallthrough
CT: control target
= control target key end

     0   :  { %s1274_s1 = inlined_call_operand.vmem [shape: bf16[128,128], index: 1, kind: input, shape index: {}]   ;;  %s1275_s0 = inlined_call_operand.vmem [shape: bf16[128,128], index: 0, kind: input, shape index: {}]   ;;  %s1276_s2 = inlined_call_operand.vmem [shape: bf16[128,128], index: 2, kind: input, shape index: {}]   ;;  %s1277_s3 = inlined_call_operand.vmem [shape: f32[1,128], index: 3, kind: input, shape index: {}]   ;;  %s1278_s4 = inlined_call_operand.vmem [shape: f32[128,128], index: 4, kind: output, shape index: {0}]   ;;  %s1279_s5 = inlined_call_operand.vmem [shape: f32[128,128], index: 5, kind: output, shape index: {1}]  }
   0x1   :  { %v770_v0 = vld [vmem:[%s1274_s1 + $0x38] sm:$0xff]  ;;  %v769_v1 = vld [vmem:[%s1274_s1 + $0x30] sm:$0xff]  ;;  %v768_v2 = vld [vmem:[%s1274_s1 + $0x28] sm:$0xff] }
   0x2   :  { %183 = vmatpush.bf16.msra.mxu0 %v770_v0  ;;  %779 = vmatpush.bf16.msra.mxu2 %v770_v0  ;;  %v767_v3 = vld [vmem:[%s1274_s1 + $0x20] sm:$0xff]  ;;  %v766_v4 = vld [vmem:[%s1274_s1 + $0x18] sm:$0xff]  ;;  %v765_v5 = vld [vmem:[%s1274_s1 + $0x10] sm:$0xff]  ;;  %v440_v0 = vlaneseq }
   0x3   :  { %v764_v6 = vld [vmem:[%s1274_s1 + $0x8] sm:$0xff]  ;;  %v763_v7 = vld [vmem:[%s1274_s1] sm:$0xff]  ;;  %v778_v12 = vld [vmem:[%s1276_s2 + $0x38] sm:$0xff] }
   0x4   :  { %v755_v8 = vld [vmem:[%s1275_s0] sm:$0xff]  ;;  %v756_v10 = vld [vmem:[%s1275_s0 + $0x8] sm:$0xff]  ;;  %375 = vmatpush.bf16.msra.mxu1 %v778_v12  ;;  %v777_v13 = vld [vmem:[%s1276_s2 + $0x30] sm:$0xff]  ;;  %787 = vmatpush.bf16.msra.mxu3 %v778_v12 }
   0x5   :  { %v759_v9 = vld [vmem:[%s1275_s0 + $0x20] sm:$0xff]  ;;  %v760_v11 = vld [vmem:[%s1275_s0 + $0x28] sm:$0xff]  ;;  %v757_v16 = vld [vmem:[%s1275_s0 + $0x10] sm:$0xff] }
   0x6   :  { %184 = vmatpush.bf16.msra.mxu0 %v769_v1  ;;  %780 = vmatpush.bf16.msra.mxu2 %v769_v1  ;;  %v776_v14 = vld [vmem:[%s1276_s2 + $0x28] sm:$0xff]  ;;  %v775_v15 = vld [vmem:[%s1276_s2 + $0x20] sm:$0xff]  ;;  %v761_v17 = vld [vmem:[%s1275_s0 + $0x30] sm:$0xff]  ;;  %v962_v1 = vand.u32 127, %v440_v0 }
   0x7   :  { %v774_v18 = vld [vmem:[%s1276_s2 + $0x18] sm:$0xff]  ;;  %v773_v21 = vld [vmem:[%s1276_s2 + $0x10] sm:$0xff]  ;;  %v772_v22 = vld [vmem:[%s1276_s2 + $0x8] sm:$0xff] }
   0x8   :  { %376 = vmatpush.bf16.msra.mxu1 %v777_v13  ;;  %788 = vmatpush.bf16.msra.mxu3 %v777_v13  ;;  %v758_v19 = vld [vmem:[%s1275_s0 + $0x18] sm:$0xff]  ;;  %v771_v23 = vld [vmem:[%s1276_s2] sm:$0xff]  ;;  %vm442_vm0 = vcmp.lt.s32.totalorder %v962_v1, 4 }
   0x9   :  { %v762_v20 = vld [vmem:[%s1275_s0 + $0x38] sm:$0xff] }
   0xa   :  { %185 = vmatpush.bf16.msra.mxu0 %v768_v2  ;;  %781 = vmatpush.bf16.msra.mxu2 %v768_v2  ;;  %v967_v2 = vld [vmem:[%s1277_s3] ss:$0 sm:$0xff] }
   0xc   :  { %377 = vmatpush.bf16.msra.mxu1 %v776_v14  ;;  %789 = vmatpush.bf16.msra.mxu3 %v776_v14 }
   0xe   :  { %186 = vmatpush.bf16.msra.mxu0 %v767_v3  ;;  %782 = vmatpush.bf16.msra.mxu2 %v767_v3 }
  0x10   :  { %378 = vmatpush.bf16.msra.mxu1 %v775_v15  ;;  %790 = vmatpush.bf16.msra.mxu3 %v775_v15 }
  0x12   :  { %187 = vmatpush.bf16.msra.mxu0 %v766_v4  ;;  %783 = vmatpush.bf16.msra.mxu2 %v766_v4 }
  0x14   :  { %379 = vmatpush.bf16.msra.mxu1 %v774_v18  ;;  %791 = vmatpush.bf16.msra.mxu3 %v774_v18 }
  0x16   :  { %188 = vmatpush.bf16.msra.mxu0 %v765_v5  ;;  %784 = vmatpush.bf16.msra.mxu2 %v765_v5 }
  0x18   :  { %380 = vmatpush.bf16.msra.mxu1 %v773_v21  ;;  %792 = vmatpush.bf16.msra.mxu3 %v773_v21 }
  0x1a   :  { %189 = vmatpush.bf16.msra.mxu0 %v764_v6  ;;  %785 = vmatpush.bf16.msra.mxu2 %v764_v6 }
  0x1c   :  { %381 = vmatpush.bf16.msra.mxu1 %v772_v22  ;;  %793 = vmatpush.bf16.msra.mxu3 %v772_v22 }
  0x1e   :  { %190 = vmatpush.bf16.msra.mxu0 %v763_v7  ;;  %786 = vmatpush.bf16.msra.mxu2 %v763_v7 }
  0x20   :  { %382 = vmatpush.bf16.msra.mxu1 %v771_v23  ;;  %794 = vmatpush.bf16.msra.mxu3 %v771_v23 }
  0x21   :  { %191 = vmatmul.bf16.vlgmr.msra.gmra.mxu0 %v755_v8  ;;  %211 = vmatmul.bf16.vlgmr.msra.gmra.mxu2 %v759_v9 }
  0x31   :  { %196 = vmatmul.bf16.gmra.mxu0 %v756_v10  ;;  %216 = vmatmul.bf16.gmra.mxu2 %v760_v11 }
  0x41   :  { %201 = vmatmul.bf16.gmra.mxu0 %v757_v16  ;;  %221 = vmatmul.bf16.gmra.mxu2 %v761_v17 }
  0x51   :  { %206 = vmatmul.bf16.gmra.mxu0 %v758_v19  ;;  %226 = vmatmul.bf16.gmra.mxu2 %v762_v20 }
  0x9e   :  { %v192_v24 = vpop.f32.mrf.mxu0 }
  0x9f   :  { %v283_v27 = vmax.f32 %v192_v24, 0.0 }
  0xa4   :  { %v212_v25 = vpop.f32.mrf.mxu2 }
  0xa5   :  { %v291_v31 = vmax.f32 %v212_v25, 0.0 }
  0xa6   :  { %v194_v26 = vpop.f32.mrf.mxu0 }
  0xa7   :  { %v284_v28 = vmax.f32 %v194_v26, 0.0 }
  0xa9   :  { %v299_v29 = vpack.c.bf16 %v284_v28, %v283_v27 }
  0xab   :  { %383 = vmatmul.bf16.vlgmr.msra.gmra.mxu1 %v299_v29 }
  0xac   :  { %v214_v30 = vpop.f32.mrf.mxu2 }
  0xad   :  { %v292_v32 = vmax.f32 %v214_v30, 0.0 }
  0xae   :  { %v197_v33 = vpop.f32.mrf.mxu0 }
  0xaf   :  { %v303_v34 = vpack.c.bf16 %v292_v32, %v291_v31  ;;  %v285_v37 = vmax.f32 %v197_v33, 0.0 }
  0xb1   :  { %403 = vmatmul.bf16.vlgmr.msra.gmra.mxu3 %v303_v34 }
  0xb4   :  { %v217_v35 = vpop.f32.mrf.mxu2 }
  0xb5   :  { %v293_v41 = vmax.f32 %v217_v35, 0.0 }
  0xb6   :  { %v199_v36 = vpop.f32.mrf.mxu0 }
  0xb7   :  { %v286_v38 = vmax.f32 %v199_v36, 0.0 }
  0xb9   :  { %v300_v39 = vpack.c.bf16 %v286_v38, %v285_v37 }
  0xbb   :  { %388 = vmatmul.bf16.gmra.mxu1 %v300_v39 }
  0xbc   :  { %v219_v40 = vpop.f32.mrf.mxu2 }
  0xbd   :  { %v294_v42 = vmax.f32 %v219_v40, 0.0 }
  0xbe   :  { %v202_v43 = vpop.f32.mrf.mxu0 }
  0xbf   :  { %v304_v44 = vpack.c.bf16 %v294_v42, %v293_v41  ;;  %v287_v47 = vmax.f32 %v202_v43, 0.0 }
  0xc1   :  { %408 = vmatmul.bf16.gmra.mxu3 %v304_v44 }
  0xc4   :  { %v222_v45 = vpop.f32.mrf.mxu2 }
  0xc5   :  { %v295_v51 = vmax.f32 %v222_v45, 0.0 }
  0xc6   :  { %v204_v46 = vpop.f32.mrf.mxu0 }
  0xc7   :  { %v288_v48 = vmax.f32 %v204_v46, 0.0 }
  0xc9   :  { %v301_v49 = vpack.c.bf16 %v288_v48, %v287_v47 }
  0xcb   :  { %393 = vmatmul.bf16.gmra.mxu1 %v301_v49 }
  0xcc   :  { %v224_v50 = vpop.f32.mrf.mxu2 }
  0xcd   :  { %v296_v52 = vmax.f32 %v224_v50, 0.0 }
  0xce   :  { %v207_v53 = vpop.f32.mrf.mxu0 }
  0xcf   :  { %v305_v54 = vpack.c.bf16 %v296_v52, %v295_v51  ;;  %v289_v57 = vmax.f32 %v207_v53, 0.0 }
  0xd1   :  { %413 = vmatmul.bf16.gmra.mxu3 %v305_v54 }
  0xd4   :  { %v227_v55 = vpop.f32.mrf.mxu2 }
  0xd5   :  { %v297_v61 = vmax.f32 %v227_v55, 0.0 }
  0xd6   :  { %v209_v56 = vpop.f32.mrf.mxu0 }
  0xd7   :  { %v290_v58 = vmax.f32 %v209_v56, 0.0 }
  0xd9   :  { %v302_v59 = vpack.c.bf16 %v290_v58, %v289_v57 }
  0xdb   :  { %398 = vmatmul.bf16.gmra.mxu1 %v302_v59 }
  0xdc   :  { %v229_v60 = vpop.f32.mrf.mxu2 }
  0xdd   :  { %v298_v62 = vmax.f32 %v229_v60, 0.0 }
  0xdf   :  { %v306_v63 = vpack.c.bf16 %v298_v62, %v297_v61 }
  0xe1   :  { %418 = vmatmul.bf16.gmra.mxu3 %v306_v63 }
 0x128   :  { %v384_v3 = vpop.f32.mrf.mxu1 }
 0x129   :  { %v385_v4 = vadd.f32 %v967_v2, %v384_v3 }
 0x12b   :  { %424 = vst [vmem:[%s1278_s4] sm:$0xff] %v385_v4  ;;  %v976_v5 = vsel %vm442_vm0, %v385_v4, -1e+30 }
 0x12c   :  { %459 = vmax.xlane.f32.xlu0 %v976_v5 }
 0x130   :  { %v386_v6 = vpop.f32.mrf.mxu1 }
 0x131   :  { %v387_v7 = vadd.f32 %v967_v2, %v386_v6 }
 0x133   :  { %425 = vst [vmem:[%s1278_s4 + $0x8] sm:$0xff] %v387_v7  ;;  %v985_v8 = vsel %vm442_vm0, %v387_v7, -1e+30 }
 0x134   :  { %v404_v9 = vpop.f32.mrf.mxu3  ;;  %461 = vmax.xlane.f32.xlu0 %v985_v8 }
 0x135   :  { %v405_v10 = vadd.f32 %v967_v2, %v404_v9 }
 0x137   :  { %432 = vst [vmem:[%s1278_s4 + $0x40] sm:$0xff] %v405_v10  ;;  %v994_v11 = vsel %vm442_vm0, %v405_v10, -1e+30 }
 0x138   :  { %475 = vmax.xlane.f32.xlu2 %v994_v11  ;;  %v389_v12 = vpop.f32.mrf.mxu1 }
 0x139   :  { %v390_v13 = vadd.f32 %v967_v2, %v389_v12 }
 0x13b   :  { %426 = vst [vmem:[%s1278_s4 + $0x10] sm:$0xff] %v390_v13  ;;  %v1003_v14 = vsel %vm442_vm0, %v390_v13, -1e+30 }
 0x13c   :  { %v406_v15 = vpop.f32.mrf.mxu3  ;;  %463 = vmax.xlane.f32.xlu1 %v1003_v14 }
 0x13d   :  { %v407_v16 = vadd.f32 %v967_v2, %v406_v15 }
 0x13f   :  { %433 = vst [vmem:[%s1278_s4 + $0x48] sm:$0xff] %v407_v16  ;;  %v1012_v17 = vsel %vm442_vm0, %v407_v16, -1e+30 }
 0x140   :  { %477 = vmax.xlane.f32.xlu0 %v1012_v17  ;;  %v391_v18 = vpop.f32.mrf.mxu1 }
 0x141   :  { %v392_v19 = vadd.f32 %v967_v2, %v391_v18 }
 0x143   :  { %427 = vst [vmem:[%s1278_s4 + $0x18] sm:$0xff] %v392_v19  ;;  %v1021_v20 = vsel %vm442_vm0, %v392_v19, -1e+30 }
 0x144   :  { %v409_v21 = vpop.f32.mrf.mxu3  ;;  %465 = vmax.xlane.f32.xlu1 %v1021_v20 }
 0x145   :  { %v410_v22 = vadd.f32 %v967_v2, %v409_v21 }
 0x147   :  { %434 = vst [vmem:[%s1278_s4 + $0x50] sm:$0xff] %v410_v22  ;;  %v1034_v25 = vsel %vm442_vm0, %v410_v22, -1e+30 }
 0x148   :  { %v394_v23 = vpop.f32.mrf.mxu1 }
 0x149   :  { %v395_v24 = vadd.f32 %v967_v2, %v394_v23 }
 0x14b   :  { %428 = vst [vmem:[%s1278_s4 + $0x20] sm:$0xff] %v395_v24  ;;  %v1038_v26 = vsel %vm442_vm0, %v395_v24, -1e+30 }
 0x14c   :  { %v411_v27 = vpop.f32.mrf.mxu3  ;;  %479 = vmax.xlane.f32.xlu1 %v1034_v25  ;;  %467 = vmax.xlane.f32.xlu2 %v1038_v26 }
 0x14d   :  { %v412_v28 = vadd.f32 %v967_v2, %v411_v27 }
 0x14f   :  { %435 = vst [vmem:[%s1278_s4 + $0x58] sm:$0xff] %v412_v28  ;;  %v1052_v31 = vsel %vm442_vm0, %v412_v28, -1e+30 }
 0x150   :  { %v396_v29 = vpop.f32.mrf.mxu1 }
 0x151   :  { %v397_v30 = vadd.f32 %v967_v2, %v396_v29 }
 0x153   :  { %429 = vst [vmem:[%s1278_s4 + $0x28] sm:$0xff] %v397_v30  ;;  %v1070_v37 = vsel %vm442_vm0, %v397_v30, -1e+30 }
 0x154   :  { %v414_v32 = vpop.f32.mrf.mxu3  ;;  %481 = vmax.xlane.f32.xlu2 %v1052_v31 }
 0x155   :  { %v415_v33 = vadd.f32 %v967_v2, %v414_v32 }
 0x157   :  { %436 = vst [vmem:[%s1278_s4 + $0x60] sm:$0xff] %v415_v33  ;;  %v1061_v34 = vsel %vm442_vm0, %v415_v33, -1e+30 }
 0x158   :  { %483 = vmax.xlane.f32.xlu0 %v1061_v34  ;;  %v399_v35 = vpop.f32.mrf.mxu1 }
 0x159   :  { %v400_v36 = vadd.f32 %v967_v2, %v399_v35 }
 0x15b   :  { %430 = vst [vmem:[%s1278_s4 + $0x30] sm:$0xff] %v400_v36  ;;  %v1079_v40 = vsel %vm442_vm0, %v400_v36, -1e+30 }
 0x15c   :  { %v416_v38 = vpop.f32.mrf.mxu3  ;;  %469 = vmax.xlane.f32.xlu2 %v1070_v37 }
 0x15d   :  { %v417_v39 = vadd.f32 %v967_v2, %v416_v38 }
 0x15f   :  { %437 = vst [vmem:[%s1278_s4 + $0x68] sm:$0xff] %v417_v39  ;;  %v1102_v47 = vsel %vm442_vm0, %v417_v39, -1e+30 }
 0x160   :  { %v401_v41 = vpop.f32.mrf.mxu1  ;;  %471 = vmax.xlane.f32.xlu0 %v1079_v40 }
 0x161   :  { %v402_v42 = vadd.f32 %v967_v2, %v401_v41 }
 0x163   :  { %431 = vst [vmem:[%s1278_s4 + $0x38] sm:$0xff] %v402_v42  ;;  %v1088_v43 = vsel %vm442_vm0, %v402_v42, -1e+30 }
 0x164   :  { %v419_v44 = vpop.f32.mrf.mxu3  ;;  %473 = vmax.xlane.f32.xlu1 %v1088_v43 }
 0x165   :  { %v420_v45 = vadd.f32 %v967_v2, %v419_v44 }
 0x167   :  { %438 = vst [vmem:[%s1278_s4 + $0x70] sm:$0xff] %v420_v45  ;;  %v1097_v46 = vsel %vm442_vm0, %v420_v45, -1e+30 }
 0x168   :  { %487 = vmax.xlane.f32.xlu2 %v1097_v46 }
 0x16c   :  { %v421_v48 = vpop.f32.mrf.mxu3  ;;  %485 = vmax.xlane.f32.xlu1 %v1102_v47 }
 0x16d   :  { %v422_v49 = vadd.f32 %v967_v2, %v421_v48 }
 0x16f   :  { %439 = vst [vmem:[%s1278_s4 + $0x78] sm:$0xff] %v422_v49  ;;  %v1111_v50 = vsel %vm442_vm0, %v422_v49, -1e+30 }
 0x170   :  { %489 = vmax.xlane.f32.xlu0 %v1111_v50 }
 0x19f   :  { %v460_v51 = vpop.xlane.xlu0 %459 }
 0x1a0   :  { %v1115_v52 = vsub.f32 %v976_v5, %v460_v51 }
 0x1a2   :  { %v507_v53 = vmul.f32 1.442695, %v1115_v52 }
 0x1a4   :  { %796 = vpow2.f32 %v507_v53 }
 0x1a7   :  { %v462_v54 = vpop.xlane.xlu0 %461 }
 0x1a8   :  { %v1119_v55 = vsub.f32 %v985_v8, %v462_v54 }
 0x1aa   :  { %v797_v56 = vpop.eup %796  ;;  %v509_v57 = vmul.f32 1.442695, %v1119_v55 }
 0x1ab   :  { %v476_v58 = vpop.xlane.xlu2 %475  ;;  %v539_v59 = vsel %vm442_vm0, %v797_v56, 0.0 }
 0x1ac   :  { %798 = vpow2.f32 %v509_v57  ;;  %v1125_v60 = vsub.f32 %v994_v11, %v476_v58  ;;  %555 = vadd.xlane.f32.xlu1 %v539_v59 }
 0x1ae   :  { %v523_v61 = vmul.f32 1.442695, %v1125_v60 }
 0x1af   :  { %v464_v62 = vpop.xlane.xlu1 %463 }
 0x1b0   :  { %800 = vpow2.f32 %v523_v61  ;;  %v1129_v63 = vsub.f32 %v1003_v14, %v464_v62 }
 0x1b2   :  { %v799_v0 = vpop.eup %798  ;;  %v511_v2 = vmul.f32 1.442695, %v1129_v63 }
 0x1b3   :  { %v478_v3 = vpop.xlane.xlu0 %477  ;;  %v540_v4 = vsel %vm442_vm0, %v799_v0, 0.0 }
 0x1b4   :  { %v1135_v5 = vsub.f32 %v1012_v17, %v478_v3  ;;  %557 = vadd.xlane.f32.xlu2 %v540_v4  ;;  %802 = vpow2.f32 %v511_v2 }
 0x1b6   :  { %v801_v6 = vpop.eup %800  ;;  %v525_v7 = vmul.f32 1.442695, %v1135_v5 }
 0x1b7   :  { %v466_v8 = vpop.xlane.xlu1 %465  ;;  %v547_v9 = vsel %vm442_vm0, %v801_v6, 0.0 }
 0x1b8   :  { %804 = vpow2.f32 %v525_v7  ;;  %v1141_v10 = vsub.f32 %v1021_v20, %v466_v8  ;;  %571 = vadd.xlane.f32.xlu0 %v547_v9 }
 0x1ba   :  { %v513_v11 = vmul.f32 1.442695, %v1141_v10  ;;  %v803_v12 = vpop.eup %802 }
 0x1bb   :  { %v541_v17 = vsel %vm442_vm0, %v803_v12, 0.0 }
 0x1bc   :  { %806 = vpow2.f32 %v513_v11 }
 0x1be   :  { %v805_v13 = vpop.eup %804 }
 0x1bf   :  { %v480_v14 = vpop.xlane.xlu1 %479  ;;  %v468_v15 = vpop.xlane.xlu2 %467  ;;  %v548_v16 = vsel %vm442_vm0, %v805_v13, 0.0 }
 0x1c0   :  { %v1149_v18 = vsub.f32 %v1034_v25, %v480_v14  ;;  %573 = vadd.xlane.f32.xlu1 %v548_v16  ;;  %559 = vadd.xlane.f32.xlu0 %v541_v17  ;;  %v1153_v20 = vsub.f32 %v1038_v26, %v468_v15 }
 0x1c2   :  { %v527_v19 = vmul.f32 1.442695, %v1149_v18  ;;  %v807_v21 = vpop.eup %806  ;;  %v515_v22 = vmul.f32 1.442695, %v1153_v20 }
 0x1c3   :  { %v542_v24 = vsel %vm442_vm0, %v807_v21, 0.0 }
 0x1c4   :  { %808 = vpow2.f32 %v527_v19 }
 0x1c5   :  { %810 = vpow2.f32 %v515_v22 }
 0x1c7   :  { %v482_v23 = vpop.xlane.xlu2 %481 }
 0x1c8   :  { %v1159_v27 = vsub.f32 %v1052_v31, %v482_v23  ;;  %561 = vadd.xlane.f32.xlu1 %v542_v24 }
 0x1ca   :  { %v809_v25 = vpop.eup %808  ;;  %v529_v28 = vmul.f32 1.442695, %v1159_v27 }
 0x1cb   :  { %v484_v29 = vpop.xlane.xlu0 %483  ;;  %v549_v26 = vsel %vm442_vm0, %v809_v25, 0.0  ;;  %v811_v35 = vpop.eup %810 }
 0x1cc   :  { %812 = vpow2.f32 %v529_v28  ;;  %v1165_v30 = vsub.f32 %v1061_v34, %v484_v29  ;;  %575 = vadd.xlane.f32.xlu2 %v549_v26  ;;  %v543_v41 = vsel %vm442_vm0, %v811_v35, 0.0 }
 0x1ce   :  { %v531_v32 = vmul.f32 1.442695, %v1165_v30 }
 0x1cf   :  { %v470_v33 = vpop.xlane.xlu2 %469 }
 0x1d0   :  { %814 = vpow2.f32 %v531_v32  ;;  %v1169_v31 = vsub.f32 %v1070_v37, %v470_v33 }
 0x1d2   :  { %v813_v36 = vpop.eup %812  ;;  %v517_v38 = vmul.f32 1.442695, %v1169_v31 }
 0x1d3   :  { %v472_v39 = vpop.xlane.xlu0 %471  ;;  %v550_v34 = vsel %vm442_vm0, %v813_v36, 0.0 }
 0x1d4   :  { %816 = vpow2.f32 %v517_v38  ;;  %v1177_v42 = vsub.f32 %v1079_v40, %v472_v39  ;;  %563 = vadd.xlane.f32.xlu2 %v543_v41  ;;  %577 = vadd.xlane.f32.xlu0 %v550_v34 }
 0x1d6   :  { %v815_v44 = vpop.eup %814  ;;  %v519_v37 = vmul.f32 1.442695, %v1177_v42 }
 0x1d7   :  { %v474_v45 = vpop.xlane.xlu1 %473  ;;  %v551_v48 = vsel %vm442_vm0, %v815_v44, 0.0 }
 0x1d8   :  { %818 = vpow2.f32 %v519_v37  ;;  %v1183_v49 = vsub.f32 %v1088_v43, %v474_v45  ;;  %579 = vadd.xlane.f32.xlu1 %v551_v48 }
 0x1da   :  { %v817_v51 = vpop.eup %816  ;;  %v521_v53 = vmul.f32 1.442695, %v1183_v49 }
 0x1db   :  { %v488_v54 = vpop.xlane.xlu2 %487  ;;  %v544_v40 = vsel %vm442_vm0, %v817_v51, 0.0 }
 0x1dc   :  { %820 = vpow2.f32 %v521_v53  ;;  %v1189_v56 = vsub.f32 %v1097_v46, %v488_v54  ;;  %565 = vadd.xlane.f32.xlu0 %v544_v40 }
 0x1de   :  { %v819_v57 = vpop.eup %818  ;;  %v535_v58 = vmul.f32 1.442695, %v1189_v56 }
 0x1df   :  { %v486_v59 = vpop.xlane.xlu1 %485  ;;  %v545_v43 = vsel %vm442_vm0, %v819_v57, 0.0 }
 0x1e0   :  { %822 = vpow2.f32 %v535_v58  ;;  %v1195_v61 = vsub.f32 %v1102_v47, %v486_v59  ;;  %567 = vadd.xlane.f32.xlu1 %v545_v43 }
 0x1e2   :  { %v821_v62 = vpop.eup %820  ;;  %v533_v0 = vmul.f32 1.442695, %v1195_v61 }
 0x1e3   :  { %v490_v2 = vpop.xlane.xlu0 %489  ;;  %v546_v46 = vsel %vm442_vm0, %v821_v62, 0.0 }
 0x1e4   :  { %824 = vpow2.f32 %v533_v0  ;;  %v1201_v3 = vsub.f32 %v1111_v50, %v490_v2  ;;  %569 = vadd.xlane.f32.xlu2 %v546_v46 }
 0x1e6   :  { %v823_v4 = vpop.eup %822  ;;  %v537_v6 = vmul.f32 1.442695, %v1201_v3 }
 0x1e7   :  { %v553_v47 = vsel %vm442_vm0, %v823_v4, 0.0 }
 0x1e8   :  { %826 = vpow2.f32 %v537_v6  ;;  %583 = vadd.xlane.f32.xlu0 %v553_v47 }
 0x1ea   :  { %v825_v7 = vpop.eup %824 }
 0x1eb   :  { %v552_v8 = vsel %vm442_vm0, %v825_v7, 0.0 }
 0x1ec   :  { %581 = vadd.xlane.f32.xlu2 %v552_v8 }
 0x1ee   :  { %v827_v9 = vpop.eup %826 }
 0x1ef   :  { %v554_v11 = vsel %vm442_vm0, %v827_v9, 0.0 }
 0x1f0   :  { %585 = vadd.xlane.f32.xlu1 %v554_v11 }
 0x21f   :  { %v556_v50 = vpop.xlane.xlu1 %555 }
 0x220   :  { %828 = vlog2.f32 %v556_v50 }
 0x226   :  { %v829_v12 = vpop.eup %828 }
 0x227   :  { %v588_v13 = vmul.f32 0.6931472, %v829_v12  ;;  %v558_v14 = vpop.xlane.xlu2 %557 }
 0x228   :  { %830 = vlog2.f32 %v558_v14 }
 0x229   :  { %v619_v15 = vsub.f32 %v1115_v52, %v588_v13 }
 0x22b   :  { %635 = vst [vmem:[%s1279_s5] sm:$0xff] %v619_v15  ;;  %v572_v16 = vpop.xlane.xlu0 %571 }
 0x22c   :  { %832 = vlog2.f32 %v572_v16 }
 0x22e   :  { %v831_v17 = vpop.eup %830 }
 0x22f   :  { %v590_v19 = vmul.f32 0.6931472, %v831_v17 }
 0x231   :  { %v620_v1 = vsub.f32 %v1119_v55, %v590_v19 }
 0x232   :  { %v833_v21 = vpop.eup %832 }
 0x233   :  { %636 = vst [vmem:[%s1279_s5 + $0x8] sm:$0xff] %v620_v1  ;;  %v604_v22 = vmul.f32 0.6931472, %v833_v21  ;;  %v574_v23 = vpop.xlane.xlu1 %573  ;;  %v560_v24 = vpop.xlane.xlu0 %559 }
 0x234   :  { %834 = vlog2.f32 %v574_v23 }
 0x235   :  { %v627_v52 = vsub.f32 %v1125_v60, %v604_v22  ;;  %836 = vlog2.f32 %v560_v24 }
 0x237   :  { %643 = vst [vmem:[%s1279_s5 + $0x40] sm:$0xff] %v627_v52 }
 0x23a   :  { %v835_v25 = vpop.eup %834 }
 0x23b   :  { %v837_v28 = vpop.eup %836  ;;  %v606_v29 = vmul.f32 0.6931472, %v835_v25  ;;  %v562_v55 = vpop.xlane.xlu1 %561 }
 0x23c   :  { %v592_v26 = vmul.f32 0.6931472, %v837_v28  ;;  %838 = vlog2.f32 %v562_v55 }
 0x23d   :  { %v628_v32 = vsub.f32 %v1135_v5, %v606_v29 }
 0x23e   :  { %v621_v33 = vsub.f32 %v1129_v63, %v592_v26 }
 0x23f   :  { %644 = vst [vmem:[%s1279_s5 + $0x48] sm:$0xff] %v628_v32  ;;  %v576_v60 = vpop.xlane.xlu2 %575 }
 0x240   :  { %637 = vst [vmem:[%s1279_s5 + $0x10] sm:$0xff] %v621_v33  ;;  %840 = vlog2.f32 %v576_v60 }
 0x242   :  { %v839_v35 = vpop.eup %838 }
 0x243   :  { %v594_v36 = vmul.f32 0.6931472, %v839_v35 }
 0x245   :  { %v622_v38 = vsub.f32 %v1141_v10, %v594_v36 }
 0x246   :  { %v841_v39 = vpop.eup %840 }
 0x247   :  { %638 = vst [vmem:[%s1279_s5 + $0x18] sm:$0xff] %v622_v38  ;;  %v608_v63 = vmul.f32 0.6931472, %v841_v39  ;;  %v564_v5 = vpop.xlane.xlu2 %563  ;;  %v578_v41 = vpop.xlane.xlu0 %577 }
 0x248   :  { %842 = vlog2.f32 %v564_v5 }
 0x249   :  { %v629_v34 = vsub.f32 %v1149_v18, %v608_v63  ;;  %844 = vlog2.f32 %v578_v41 }
 0x24b   :  { %645 = vst [vmem:[%s1279_s5 + $0x50] sm:$0xff] %v629_v34  ;;  %v580_v44 = vpop.xlane.xlu1 %579 }
 0x24c   :  { %846 = vlog2.f32 %v580_v44 }
 0x24e   :  { %v843_v37 = vpop.eup %842 }
 0x24f   :  { %v845_v10 = vpop.eup %844  ;;  %v596_v45 = vmul.f32 0.6931472, %v843_v37  ;;  %v566_v48 = vpop.xlane.xlu0 %565 }
 0x250   :  { %v610_v51 = vmul.f32 0.6931472, %v845_v10  ;;  %848 = vlog2.f32 %v566_v48 }
 0x251   :  { %v623_v53 = vsub.f32 %v1153_v20, %v596_v45 }
 0x252   :  { %v847_v54 = vpop.eup %846  ;;  %v630_v40 = vsub.f32 %v1159_v27, %v610_v51 }
 0x253   :  { %639 = vst [vmem:[%s1279_s5 + $0x20] sm:$0xff] %v623_v53  ;;  %v612_v18 = vmul.f32 0.6931472, %v847_v54  ;;  %v568_v57 = vpop.xlane.xlu1 %567 }
 0x254   :  { %646 = vst [vmem:[%s1279_s5 + $0x58] sm:$0xff] %v630_v40  ;;  %850 = vlog2.f32 %v568_v57 }
 0x255   :  { %v631_v58 = vsub.f32 %v1165_v30, %v612_v18 }
 0x256   :  { %v849_v59 = vpop.eup %848 }
 0x257   :  { %647 = vst [vmem:[%s1279_s5 + $0x60] sm:$0xff] %v631_v58  ;;  %v598_v20 = vmul.f32 0.6931472, %v849_v59  ;;  %v570_v27 = vpop.xlane.xlu2 %569 }
 0x258   :  { %852 = vlog2.f32 %v570_v27 }
 0x259   :  { %v624_v43 = vsub.f32 %v1169_v31, %v598_v20 }
 0x25a   :  { %v851_v62 = vpop.eup %850 }
 0x25b   :  { %640 = vst [vmem:[%s1279_s5 + $0x28] sm:$0xff] %v624_v43  ;;  %v600_v0 = vmul.f32 0.6931472, %v851_v62  ;;  %v584_v2 = vpop.xlane.xlu0 %583 }
 0x25c   :  { %854 = vlog2.f32 %v584_v2 }
 0x25d   :  { %v625_v30 = vsub.f32 %v1177_v42, %v600_v0 }
 0x25e   :  { %v853_v46 = vpop.eup %852 }
 0x25f   :  { %641 = vst [vmem:[%s1279_s5 + $0x30] sm:$0xff] %v625_v30  ;;  %v602_v4 = vmul.f32 0.6931472, %v853_v46  ;;  %v582_v6 = vpop.xlane.xlu2 %581 }
 0x260   :  { %856 = vlog2.f32 %v582_v6 }
 0x261   :  { %v626_v31 = vsub.f32 %v1183_v49, %v602_v4 }
 0x262   :  { %v855_v47 = vpop.eup %854 }
 0x263   :  { %642 = vst [vmem:[%s1279_s5 + $0x38] sm:$0xff] %v626_v31  ;;  %v616_v7 = vmul.f32 0.6931472, %v855_v47  ;;  %v586_v8 = vpop.xlane.xlu1 %585 }
 0x264   :  { %858 = vlog2.f32 %v586_v8 }
 0x265   :  { %v633_v42 = vsub.f32 %v1189_v56, %v616_v7 }
 0x266   :  { %v857_v9 = vpop.eup %856 }
 0x267   :  { %649 = vst [vmem:[%s1279_s5 + $0x70] sm:$0xff] %v633_v42  ;;  %v614_v11 = vmul.f32 0.6931472, %v857_v9 }
 0x269   :  { %v632_v50 = vsub.f32 %v1195_v61, %v614_v11 }
 0x26a   :  { %v859_v12 = vpop.eup %858 }
 0x26b   :  { %648 = vst [vmem:[%s1279_s5 + $0x68] sm:$0xff] %v632_v50  ;;  %v618_v49 = vmul.f32 0.6931472, %v859_v12 }
 0x26d   :  { %v634_v13 = vsub.f32 %v1201_v3, %v618_v49 }
 0x26f   :  { %650 = vst [vmem:[%s1279_s5 + $0x78] sm:$0xff] %v634_v13 }

</bundles_post_ra>
